<compile_context>
chip_gen: v7x
topology: tpu7x:2x2x1
jax: 0.10.0
libtpu: 0.0.40
codegen_flags: <defaults>
</compile_context>

<pallas_src>
import functools
import math

import jax
import jax.numpy as jnp
from jax.experimental import pallas as pl
from jax.experimental.pallas import tpu as pltpu


def _dice_loss_kernel(pred_ref, targ_ref, out_i_ref, out_u_ref,
                      *, rows, tr, apply_mask):
    """Grid = (batch, row_chunks).

    pred_ref, targ_ref : (TR, 128) VMEM tiles (native dtype, leading batch dim
                         squeezed by the BlockSpec)
    out_i_ref, out_u_ref : (8, 128) f32 per-batch partial sums (resident across
                         the reduction axis; acts as the accumulator)
    """
    k = pl.program_id(1)

    @pl.when(k == 0)
    def _init():
        out_i_ref[...] = jnp.zeros_like(out_i_ref)
        out_u_ref[...] = jnp.zeros_like(out_u_ref)

    p = pred_ref[...].astype(jnp.float32)   # (TR, 128)
    t = targ_ref[...].astype(jnp.float32)

    def accumulate(p, t):
        prod = p * t
        psum = p + t
        if tr % 8 == 0:
            # Fold the tile in-vreg: (TR,128) -> (TR//8, 8, 128) -> (8, 128).
            # Pure VPU adds; only a 4 KiB accumulator is read/written.
            out_i_ref[...] += prod.reshape(tr // 8, 8, 128).sum(axis=0)
            out_u_ref[...] += psum.reshape(tr // 8, 8, 128).sum(axis=0)
        else:
            # Rare small-input path (rows < 8, single chunk): sublane reduce.
            out_i_ref[:1, :] += prod.sum(axis=0, keepdims=True)
            out_u_ref[:1, :] += psum.sum(axis=0, keepdims=True)

    if apply_mask:
        last = pl.num_programs(1) - 1

        @pl.when(k != last)
        def _main():
            accumulate(p, t)          # hot path: no mask work

        @pl.when(k == last)
        def _tail():
            # Only the final ragged chunk pays for the mask.
            valid = rows - k * tr
            row_id = jax.lax.broadcasted_iota(jnp.int32, p.shape, 0)
            keep = row_id < valid
            accumulate(jnp.where(keep, p, 0.0), jnp.where(keep, t, 0.0))
    else:
        accumulate(p, t)


def dice_loss(pred, target, epsilon=1e-6, block_rows=8192):
    """Pallas implementation of DiceLoss.forward for NCHW pred/target."""
    assert pred.shape == target.shape and pred.ndim == 4
    b = pred.shape[0]
    n = math.prod(pred.shape[1:])

    # Flatten (C, H, W) -> N in native dtype (free reshape, no HBM copy).
    pred2 = pred.reshape(b, n)
    targ2 = target.reshape(b, n)

    if n % 128 != 0:
        # TODO(synk): replace this rare fallback with an in-kernel lane mask on
        # the final block; jnp.pad materializes full HBM copies of both inputs.
        pad = 128 - (n % 128)
        pred2 = jnp.pad(pred2, ((0, 0), (0, pad)))
        targ2 = jnp.pad(targ2, ((0, 0), (0, pad)))

    rows = pred2.shape[1] // 128
    pred3 = pred2.reshape(b, rows, 128)   # free reshape (lane-major view)
    targ3 = targ2.reshape(b, rows, 128)

    itemsize = jnp.dtype(pred.dtype).itemsize

    # VMEM budget from the chip (v5e/v6e: 128 MiB, v7x: 64 MiB) with headroom;
    # clamp the row-tile so 2 inputs x 2 pipeline buffers always fit.
    try:
        vmem_cap = int(pltpu.get_tpu_info().vmem_capacity_bytes)
    except Exception:
        vmem_cap = 64 << 20                      # conservative (safe on v7x)
    budget = int(0.7 * vmem_cap)
    max_tr = (budget - (4 << 20)) // (4 * 128 * itemsize)
    max_tr = max(8, (max_tr // 8) * 8)
    block_rows = max(8, min(block_rows, max_tr))

    # Row-tile: full extent if small, otherwise a multiple of 8 sublanes chosen
    # so the chunks cover `rows` as tightly as possible (mask usually unneeded).
    if rows <= block_rows:
        tr = rows
        n_chunks = 1
    else:
        n_chunks = pl.cdiv(rows, block_rows)
        tr = -(-rows // n_chunks)          # ceil(rows / n_chunks)
        tr = ((tr + 7) // 8) * 8           # round up to a sublane multiple
        n_chunks = pl.cdiv(rows, tr)
    apply_mask = (tr * n_chunks != rows)

    # Explicit VMEM limit: by construction of max_tr this never drops below
    # the actual need, so tile-size tuning cannot break compilation.
    tile_bytes = tr * 128 * itemsize
    vmem_need = 2 * 2 * tile_bytes + 4 * (8 * 128 * 4) + (2 << 20)
    vmem_limit = int(min(max(vmem_need, 32 << 20), budget))

    cost = pl.CostEstimate(
        flops=4 * b * rows * 128,
        transcendentals=0,
        bytes_accessed=2 * b * rows * 128 * itemsize + 2 * b * 8 * 128 * 4,
    )

    kernel = functools.partial(
        _dice_loss_kernel, rows=rows, tr=tr, apply_mask=apply_mask)

    out_i, out_u = pl.pallas_call(
        kernel,
        out_shape=(jax.ShapeDtypeStruct((b, 8, 128), jnp.float32),
                   jax.ShapeDtypeStruct((b, 8, 128), jnp.float32)),
        grid_spec=pltpu.PrefetchScalarGridSpec(
            num_scalar_prefetch=0,
            grid=(b, n_chunks),
            in_specs=[
                pl.BlockSpec((None, tr, 128), lambda bb, kk: (bb, kk, 0)),
                pl.BlockSpec((None, tr, 128), lambda bb, kk: (bb, kk, 0)),
            ],
            out_specs=[
                pl.BlockSpec((None, 8, 128), lambda bb, kk: (bb, 0, 0)),
                pl.BlockSpec((None, 8, 128), lambda bb, kk: (bb, 0, 0)),
            ],
        ),
        compiler_params=pltpu.CompilerParams(
            dimension_semantics=("parallel", "arbitrary"),
            vmem_limit_bytes=vmem_limit,
        ),
        cost_estimate=cost,
    )(pred3, targ3)

    # Tiny wrapper-side finish: cross-lane fold of the (8,128) partials,
    # dice division, and the mean over batch.
    inter = jnp.sum(out_i, axis=(1, 2))                       # (B,)
    union = jnp.sum(out_u, axis=(1, 2))                       # (B,)
    dice = (2.0 * inter + epsilon) / (union + epsilon)
    return 1.0 - jnp.mean(dice)


def _dice_loss_ref(pred, target, epsilon=1e-6):
    inter = jnp.sum(pred * target, axis=(-1, -2, -3))
    union = jnp.sum(pred, axis=(-1, -2, -3)) + jnp.sum(target, axis=(-1, -2, -3))
    dice = (2.0 * inter + epsilon) / (union + epsilon)
    return 1.0 - jnp.mean(dice)


if __name__ == "__main__":
    key = jax.random.PRNGKey(0)
    kp, kt = jax.random.split(key)

    # Small NCHW shapes: batch=2, channels=4, spatial=16x16.
    pred = jax.nn.sigmoid(jax.random.normal(kp, (2, 4, 16, 16), dtype=jnp.float32))
    target = (jax.random.uniform(kt, (2, 4, 16, 16)) > 0.5).astype(jnp.float32)

    loss = jax.block_until_ready(dice_loss(pred, target))
    ref = jax.block_until_ready(_dice_loss_ref(pred, target))

    assert jnp.allclose(loss, ref, atol=1e-5, rtol=1e-5), (loss, ref)
    print("KERNEL_OK")
</pallas_src>

<mosaic_0001>
module attributes {stable_mosaic.version = 11 : i64} {
  func.func @_dice_loss_kernel(%arg0: i32, %arg1: i32, %arg2: memref<1x8x128xf32, #tpu.memory_space<vmem>>, %arg3: memref<1x8x128xf32, #tpu.memory_space<vmem>>, %arg4: memref<1x8x128xf32, #tpu.memory_space<vmem>>, %arg5: memref<1x8x128xf32, #tpu.memory_space<vmem>>) attributes {dimension_semantics = [#tpu.dimension_semantics<parallel>, #tpu.dimension_semantics<arbitrary>], iteration_bounds = array<i64: 2, 1>, scalar_prefetch = 0 : i64, scratch_operands = 0 : i64, tpu.core_type = #tpu.core_type<tc>, window_params = [{transform_indices = @transform_0, window_bounds = array<i64: 1, 8, 128>}, {transform_indices = @transform_1, window_bounds = array<i64: 1, 8, 128>}, {transform_indices = @transform_2, window_bounds = array<i64: 1, 8, 128>}, {transform_indices = @transform_3, window_bounds = array<i64: 1, 8, 128>}]} {
    %c0_i32 = arith.constant 0 : i32
    %0 = arith.cmpi eq, %arg1, %c0_i32 : i32
    %1 = arith.extui %0 : i1 to i32
    %c0_i32_0 = arith.constant 0 : i32
    %2 = arith.cmpi ne, %1, %c0_i32_0 : i32
    scf.if %2 {
      %cst_19 = arith.constant 0.000000e+00 : f32
      %25 = vector.broadcast %cst_19 : f32 to vector<8x128xf32>
      %c0_20 = arith.constant 0 : index
      %c0_21 = arith.constant 0 : index
      %c0_22 = arith.constant 0 : index
      %26 = vector.load %arg4[%c0_20, %c0_21, %c0_22] : memref<1x8x128xf32, #tpu.memory_space<vmem>>, vector<1x8x128xf32>
      %27 = vector.shape_cast %26 : vector<1x8x128xf32> to vector<8x128xf32>
      %28 = vector.shape_cast %25 : vector<8x128xf32> to vector<1x8x128xf32>
      tpu.vector_store %arg4[%c0_20, %c0_21, %c0_22], %28 {strides = array<i32>} : memref<1x8x128xf32, #tpu.memory_space<vmem>>, vector<1x8x128xf32>,
      %cst_23 = arith.constant 0.000000e+00 : f32
      %29 = vector.broadcast %cst_23 : f32 to vector<8x128xf32>
      %c0_24 = arith.constant 0 : index
      %c0_25 = arith.constant 0 : index
      %c0_26 = arith.constant 0 : index
      %30 = vector.load %arg5[%c0_24, %c0_25, %c0_26] : memref<1x8x128xf32, #tpu.memory_space<vmem>>, vector<1x8x128xf32>
      %31 = vector.shape_cast %30 : vector<1x8x128xf32> to vector<8x128xf32>
      %32 = vector.shape_cast %29 : vector<8x128xf32> to vector<1x8x128xf32>
      tpu.vector_store %arg5[%c0_24, %c0_25, %c0_26], %32 {strides = array<i32>} : memref<1x8x128xf32, #tpu.memory_space<vmem>>, vector<1x8x128xf32>,
    } else {
    }
    %c0 = arith.constant 0 : index
    %c0_1 = arith.constant 0 : index
    %c0_2 = arith.constant 0 : index
    %3 = vector.load %arg2[%c0, %c0_1, %c0_2] : memref<1x8x128xf32, #tpu.memory_space<vmem>>, vector<1x8x128xf32>
    %4 = vector.shape_cast %3 : vector<1x8x128xf32> to vector<8x128xf32>
    %c0_3 = arith.constant 0 : index
    %c0_4 = arith.constant 0 : index
    %c0_5 = arith.constant 0 : index
    %5 = vector.load %arg3[%c0_3, %c0_4, %c0_5] : memref<1x8x128xf32, #tpu.memory_space<vmem>>, vector<1x8x128xf32>
    %6 = vector.shape_cast %5 : vector<1x8x128xf32> to vector<8x128xf32>
    %7 = arith.mulf %4, %6 : vector<8x128xf32>
    %8 = arith.addf %4, %6 : vector<8x128xf32>
    %c0_6 = arith.constant 0 : index
    %c0_7 = arith.constant 0 : index
    %c0_8 = arith.constant 0 : index
    %9 = vector.load %arg4[%c0_6, %c0_7, %c0_8] : memref<1x8x128xf32, #tpu.memory_space<vmem>>, vector<1x8x128xf32>
    %10 = vector.shape_cast %9 : vector<1x8x128xf32> to vector<8x128xf32>
    %11 = vector.shape_cast %7 : vector<8x128xf32> to vector<1x8x128xf32>
    %cst = arith.constant dense<0.000000e+00> : vector<8x128xf32>
    %12 = vector.multi_reduction <add>, %11, %cst [0] : vector<1x8x128xf32> to vector<8x128xf32>
    %13 = arith.addf %10, %12 : vector<8x128xf32>
    %c0_9 = arith.constant 0 : index
    %c0_10 = arith.constant 0 : index
    %c0_11 = arith.constant 0 : index
    %14 = vector.load %arg4[%c0_9, %c0_10, %c0_11] : memref<1x8x128xf32, #tpu.memory_space<vmem>>, vector<1x8x128xf32>
    %15 = vector.shape_cast %14 : vector<1x8x128xf32> to vector<8x128xf32>
    %16 = vector.shape_cast %13 : vector<8x128xf32> to vector<1x8x128xf32>
    tpu.vector_store %arg4[%c0_9, %c0_10, %c0_11], %16 {strides = array<i32>} : memref<1x8x128xf32, #tpu.memory_space<vmem>>, vector<1x8x128xf32>,
    %c0_12 = arith.constant 0 : index
    %c0_13 = arith.constant 0 : index
    %c0_14 = arith.constant 0 : index
    %17 = vector.load %arg5[%c0_12, %c0_13, %c0_14] : memref<1x8x128xf32, #tpu.memory_space<vmem>>, vector<1x8x128xf32>
    %18 = vector.shape_cast %17 : vector<1x8x128xf32> to vector<8x128xf32>
    %19 = vector.shape_cast %8 : vector<8x128xf32> to vector<1x8x128xf32>
    %cst_15 = arith.constant dense<0.000000e+00> : vector<8x128xf32>
    %20 = vector.multi_reduction <add>, %19, %cst_15 [0] : vector<1x8x128xf32> to vector<8x128xf32>
    %21 = arith.addf %18, %20 : vector<8x128xf32>
    %c0_16 = arith.constant 0 : index
    %c0_17 = arith.constant 0 : index
    %c0_18 = arith.constant 0 : index
    %22 = vector.load %arg5[%c0_16, %c0_17, %c0_18] : memref<1x8x128xf32, #tpu.memory_space<vmem>>, vector<1x8x128xf32>
    %23 = vector.shape_cast %22 : vector<1x8x128xf32> to vector<8x128xf32>
    %24 = vector.shape_cast %21 : vector<8x128xf32> to vector<1x8x128xf32>
    tpu.vector_store %arg5[%c0_16, %c0_17, %c0_18], %24 {strides = array<i32>} : memref<1x8x128xf32, #tpu.memory_space<vmem>>, vector<1x8x128xf32>,
    return
  }
  func.func @transform_0(%arg0: i32, %arg1: i32) -> (i32, i32, i32) {
    %c0_i32 = arith.constant 0 : i32
    %c0_i32_0 = arith.constant 0 : i32
    return %arg0, %arg1, %c0_i32 : i32, i32, i32
  }
  func.func @transform_1(%arg0: i32, %arg1: i32) -> (i32, i32, i32) {
    %c0_i32 = arith.constant 0 : i32
    %c0_i32_0 = arith.constant 0 : i32
    return %arg0, %arg1, %c0_i32 : i32, i32, i32
  }
  func.func @transform_2(%arg0: i32, %arg1: i32) -> (i32, i32, i32) {
    %c0_i32 = arith.constant 0 : i32
    %c0_i32_0 = arith.constant 0 : i32
    %c0_i32_1 = arith.constant 0 : i32
    return %arg0, %c0_i32, %c0_i32_0 : i32, i32, i32
  }
  func.func @transform_3(%arg0: i32, %arg1: i32) -> (i32, i32, i32) {
    %c0_i32 = arith.constant 0 : i32
    %c0_i32_0 = arith.constant 0 : i32
    %c0_i32_1 = arith.constant 0 : i32
    return %arg0, %c0_i32, %c0_i32_0 : i32, i32, i32
  }
}

</mosaic_0001>

<bundles_post_ra>
// kernel: tpu_custom_call.1
= control target key start
LH: loop header
LB: loop body
LE: loop exit
PB: predicated region body
PF: predicated region fallthrough
CT: control target
= control target key end

     0   :  { %9 = vsyncpa [#allocation3], 0  ;;  %s982_s0 = inlined_call_operand.hbm [shape: f32[2,8,128], index: 0, kind: input, shape index: {}]   ;;  %s983_s1 = inlined_call_operand.hbm [shape: f32[2,8,128], index: 1, kind: input, shape index: {}]   ;;  %s984_s2 = inlined_call_operand.hbm [shape: f32[2,8,128], index: 2, kind: output, shape index: {0}]   ;;  %s985_s3 = inlined_call_operand.hbm [shape: f32[2,8,128], index: 3, kind: output, shape index: {1}]  }
   0x1   :  { %11 = vsyncpa [#allocation3 + $0x1], 0 }
   0x2   :  { %12 = vsyncpa [#allocation6], 0 }
   0x3   :  { %14 = vsyncpa [#allocation6 + $0x1], 0 }
   0x4   :  { %15 = vsyncpa [#allocation4], 0 }
   0x5   :  { %17 = vsyncpa [#allocation4 + $0x1], 0 }
   0x6   :  { %18 = vsyncpa [#allocation9], 0 }
   0x7   :  { %20 = vsyncpa [#allocation9 + $0x1], 0  ;;  %s733_s12 = smov 0   ;;  %s735_s13 = smov 0  }
   0x8   :  { %s737_s14 = smov 0   ;;  %s739_s15 = smov 0  }
   0x9   :  { %s741_s16 = smov 0   ;;  %s743_s17 = smov 0  }
   0xa LB: > { %s437_s18 = sadd.s32 4294967295, %s707_s17   ;;  %s438_s19 = sadd.s32 4294967294, %s707_s17   ;;  %s707_s17 = sphi %s743_s17, %s26_s17   ;;  %s703_s16 = sphi %s741_s16, %s1005_s16   ;;  %s699_s15 = sphi %s739_s15, %s1004_s15   ;;  %s695_s14 = sphi %s737_s14, %s1003_s14   ;;  %s691_s13 = sphi %s735_s13, %s1002_s13   ;;  %s687_s12 = sphi %s733_s12, %s1001_s12  }
   0xb   : > { %s38_s20 = sadd.s32 1, %s703_s16  ;;  %s47_s21 = sadd.s32 1, %s695_s14 }
   0xc   : > { %p40_p0 = scmp.ge.s32.totalorder %s38_s20, 2  ;;  %p54_p1 = scmp.ne.s32.totalorder %s695_s14, %s691_s13 }
   0xd   : > { %p55_p2 = scmp.eq.s32.totalorder %s707_s17, 0  ;;  %p60_p3 = scmp.ne.s32.totalorder %s691_s13, %s687_s12 }
   0xe   : > { %s1007_s20 = smov (%p40_p0, %s38_s20), 0  ;;  %p61_p5 = scmp.eq.s32.totalorder %s437_s18, 0 }
   0xf   : > { %p774_p4 = por %p55_p2, %p54_p1  ;;  %s42_s23 = ssub.s32 %s703_s16, %s1007_s20 }
  0x10   : > { %p112_p6 = scmp.eq.s32.totalorder %s437_s18, 1  ;;  %p45_p7 = scmp.eq.s32.totalorder %s42_s23, 0 }
  0x11   : > { %p780_p8 = por %p61_p5, %p60_p3  ;;  %p118_p10 = scmp.eq.s32.totalorder %s438_s19, 1 }
  0x12   : > { %p784_p9 = por %p112_p6, %p54_p1  ;;  %p478_p13 = scmp.lt.s32.totalorder %s707_s17, 2 }
  0x13   : > { %s989_s24 = scalar_select %p780_p8, 1, 0 }
  0x14   : > { %s990_s25 = scalar_select %p784_p9, 1, 0 }
  0x15   : > { %s789_s26 = scalar_select %p45_p7, %s695_s14, %s47_s21  }
  0x16   : > { %p791_p11 = por %p118_p10, %p60_p3  ;;  %s798_s28 = sand.u32 1, %s695_s14  }
  0x17   : > { %s441_s29 = sshll.u32 %s798_s28, 3  ;;  %s442_s30 = sshll.u32 %s703_s16, 7 }
  0x18   : > { %s991_s27 = scalar_select %p791_p11, 1, 0 }
  0x19   : > { %s807_s6 = scalar_lea.hbm %s982_s0, %s442_s30  ;;  %s168_s7 = scalar_lea.vmem [#allocation2], %s441_s29 }
  0x1a   : > { %s176_s8 = sshll.u32 %s168_s7, 4  ;;  %p815_p0 = pnand %p478_p13, %p774_p4  ;;  %s811_s8 = int_to_ptr.vmem [resolvable:$true] %s176_s8 }
  0x1b   : > { %s165_s10 = scalar_lea.sflag [#allocation3], %s798_s28  ;;  %s529_s11 = scalar_lea.hbm %s807_s6, 128 }
  0x1c   : > { %p530_p3 = scmp.ne.s32.totalorder %s807_s6, %s529_s11  ;;  %p531_p5 = pneg %p815_p0 }
  0x1d   : > { %s534_s21 = scalar_lea.hbm %s982_s0, 256  ;;  %p535_p4 = scmp.lt.u32.totalorder %s807_s6, %s982_s0 }
  0x1e   : > { %p532_p6 = pnand %p531_p5, %p530_p3  ;;  %p536_p10 = scmp.lt.u32.totalorder %s534_s21, %s529_s11 }
  0x1f   : > { %p538_p12 = scmp.lt.u32.totalorder %s529_s11, %s807_s6 }
  0x20   : > { %p533_p7 = pneg %p532_p6  ;;  %p537_p13 = por %p536_p10, %p535_p4 }
  0x22   : > { %p539_p1 = por %p538_p12, %p537_p13 }
  0x24   : > { %p540_p2 = pnand %p539_p1, %p533_p7 }
  0x26   : > { %543 = shalt.err (!%p540_p2)
}
  0x27   : > { %s544_s4 = scalar_lea.vmem %s811_s8, 128  ;;  %s709_s5 = smov [#allocation2]  }
  0x28   : > { %p545_p3 = scmp.ne.s32.totalorder %s811_s8, %s544_s4  ;;  %s549_s7 = sshll.u32 %s709_s5, 4  ;;  %s550_s7 = int_to_ptr.vmem [resolvable:$false] %s549_s7 }
  0x29   : > { %s551_s18 = scalar_lea.vmem %s550_s7, 256  ;;  %p552_p9 = scmp.lt.s32.totalorder %s811_s8, %s550_s7 }
  0x2a   : > { %p547_p6 = pnand %p545_p3, %p531_p5  ;;  %p553_p4 = scmp.lt.s32.totalorder %s551_s18, %s544_s4 }
  0x2c   : > { %p548_p11 = pneg %p547_p6  ;;  %p554_p10 = por %p553_p4, %p552_p9 }
  0x2e   : > { %p555_p12 = pnand %p554_p10, %p548_p11 }
  0x30   : > { %558 = shalt.err (!%p555_p12)
}
  0x31   : > { %467 = dma.hbm_to_vmem [thread:$0]  (!%p815_p0), %s807_s6, 128, %s811_s8, %s165_s10  }
  0x32   : > { %p993_p1 = scmp.lt.s32.totalorder %s707_s17, 3  ;;  %p994_p2 = scmp.ge.s32.totalorder %s707_s17, 1 }
  0x33   : > { %s860_s22 = scalar_lea.hbm %s983_s1, %s442_s30  ;;  %s187_s23 = scalar_lea.vmem [#allocation5], %s441_s29 }
  0x34   : > { %p851_p7 = pnand %p994_p2, %p993_p1  ;;  %s195_s4 = sshll.u32 %s187_s23, 4  ;;  %s196_s4 = int_to_ptr.vmem [resolvable:$true] %s195_s4 }
  0x35   : > { %s184_s6 = scalar_lea.sflag [#allocation6], %s798_s28  ;;  %s559_s8 = scalar_lea.hbm %s860_s22, 128 }
  0x36   : > { %s995_s11 = scalar_select %p851_p7, 1, 0 }
  0x37   : > { %p560_p9 = scmp.ne.s32.totalorder %s860_s22, %s559_s8  ;;  %s564_s30 = scalar_lea.hbm %s983_s1, 256 }
  0x38   : > { %p565_p3 = scmp.lt.u32.totalorder %s860_s22, %s983_s1  ;;  %p566_p6 = scmp.lt.u32.totalorder %s564_s30, %s559_s8 }
  0x39   : > { %p562_p11 = pnand %p560_p9, %p531_p5  ;;  %p568_p10 = scmp.lt.u32.totalorder %s559_s8, %s860_s22 }
  0x3a   : > { %p567_p4 = por %p566_p6, %p565_p3 }
  0x3b   : > { %p563_p13 = pneg %p562_p11 }
  0x3c   : > { %p569_p12 = por %p568_p10, %p567_p4 }
  0x3e   : > { %p570_p1 = pnand %p569_p12, %p563_p13 }
  0x40   : > { %573 = shalt.err (!%p570_p1)
}
  0x41   : > { %s574_s28 = scalar_lea.vmem %s196_s4, 128  ;;  %s710_s29 = smov [#allocation5]  }
  0x42   : > { %p575_p2 = scmp.ne.s32.totalorder %s196_s4, %s574_s28  ;;  %s579_s19 = sshll.u32 %s710_s29, 4  ;;  %s580_s19 = int_to_ptr.vmem [resolvable:$false] %s579_s19 }
  0x43   : > { %s581_s21 = scalar_lea.vmem %s580_s19, 256  ;;  %p582_p8 = scmp.lt.s32.totalorder %s196_s4, %s580_s19 }
  0x44   : > { %p577_p9 = pnand %p575_p2, %p531_p5  ;;  %p583_p7 = scmp.lt.s32.totalorder %s581_s21, %s574_s28 }
  0x46   : > { %p578_p11 = pneg %p577_p9  ;;  %p584_p3 = por %p583_p7, %p582_p8 }
  0x48   : > { %p585_p6 = pnand %p584_p3, %p578_p11 }
  0x4a   : > { %588 = shalt.err (!%p585_p6)
}
  0x4b   : > { %470 = dma.hbm_to_vmem [thread:$0]  (!%p815_p0), %s860_s22, 128, %s196_s4, %s184_s6  }
  0x4c   : > { %p996_p13 = scmp.ne.s32.totalorder %s995_s11, 0 }
  0x4d   : > { %s887_s23 = sand.u32 (!%p996_p13), 1, %s691_s13   ;;  %p997_p5 = scmp.ne.s32.totalorder (!%p996_p13), %s989_s24, 0 }
  0x4e   : > { %204 = sbr.rel (%p996_p13) target bundleno = 138 (0x8a), region = 28  ;;  %s446_s8 = sshll.u32 (!%p996_p13), %s887_s23, 3 }
  0x4f   : > { %s207_s10 = scalar_lea.sflag (!%p996_p13), [#allocation3], %s887_s23  ;;  %s210_s5 = scalar_lea.vmem (!%p996_p13), [#allocation2], %s446_s8 }
  0x55   : > { %670 = dma.done.wait (%p997_p5), %s207_s10, 128  }
  0x56   : > { %672 = vsyncadd (%p997_p5), %s207_s10, 4294967168  ;;  %s216_s9 = scalar_lea.sflag [#allocation6], %s887_s23  ;;  %s219_s22 = scalar_lea.vmem [#allocation5], %s446_s8 }
  0x57   : > { %674 = dma.done.wait (%p997_p5), %s216_s9, 128  }
  0x58   : > { %676 = vsyncadd (%p997_p5), %s216_s9, 4294967168  ;;  %s452_s11 = sshll.u32 %s699_s15, 7  ;;  %v258_v0 = vld [vmem:[%s210_s5] sm:$0xff]  ;;  %v259_v1 = vld [vmem:[%s219_s22] sm:$0xff]  ;;  %s244_s4 = scalar_lea.vmem [#allocation7], %s446_s8 }
  0x59   : > { %s289_s6 = sshll.u32 %s244_s4, 4  ;;  %v260_v2 = vmul.f32 %v259_v1, %v258_v0  ;;  %v261_v3 = vadd.f32 %v259_v1, %v258_v0  ;;  %s251_s30 = scalar_lea.vmem [#allocation8], %s446_s8  ;;  %s906_s6 = int_to_ptr.vmem [resolvable:$true] %s289_s6 }
  0x5a   : > { %s302_s7 = sshll.u32 %s251_s30, 4  ;;  %s904_s29 = scalar_lea.hbm %s984_s2, %s452_s11  ;;  %s913_s7 = int_to_ptr.vmem [resolvable:$true] %s302_s7 }
  0x5b   : > { %s911_s15 = scalar_lea.hbm %s985_s3, %s452_s11  ;;  %265 = vst [vmem:[%s244_s4] sm:$0xff] %v260_v2  ;;  %269 = vst [vmem:[%s251_s30] sm:$0xff] %v261_v3  ;;  %s271_s21 = scalar_lea.sflag [#allocation4], %s887_s23 }
  0x5c   : > { %s589_s8 = scalar_lea.vmem %s906_s6, 128  ;;  %p998_p0 = scmp.ne.s32.totalorder %s990_s25, 0 }
  0x5d   : > { %p590_p8 = scmp.ne.s32.totalorder %s906_s6, %s589_s8  ;;  %s711_s10 = smov [#allocation7]  }
  0x5e   : > { %s593_s5 = sshll.u32 %s711_s10, 4  ;;  %s594_s5 = int_to_ptr.vmem [resolvable:$false] %s593_s5 }
  0x5f   : > { %p591_p7 = pnand %p590_p8, %p998_p0  ;;  %s595_s9 = scalar_lea.vmem %s594_s5, 256 }
  0x60   : > { %p596_p10 = scmp.lt.s32.totalorder %s906_s6, %s594_s5  ;;  %p597_p12 = scmp.lt.s32.totalorder %s595_s9, %s589_s8 }
  0x61   : > { %p592_p4 = pneg %p591_p7 }
  0x62   : > { %p598_p1 = por %p597_p12, %p596_p10 }
  0x64   : > { %p599_p2 = pnand %p598_p1, %p592_p4 }
  0x66   : > { %602 = shalt.err (!%p599_p2)
}
  0x67   : > { %s603_s22 = scalar_lea.hbm %s904_s29, 128  ;;  %s607_s30 = scalar_lea.hbm %s984_s2, 256 }
  0x68   : > { %p604_p9 = scmp.ne.s32.totalorder %s904_s29, %s603_s22  ;;  %p608_p6 = scmp.lt.u32.totalorder %s904_s29, %s984_s2 }
  0x69   : > { %p609_p13 = scmp.lt.u32.totalorder %s607_s30, %s603_s22  ;;  %p611_p8 = scmp.lt.u32.totalorder %s603_s22, %s904_s29 }
  0x6a   : > { %p605_p11 = pnand %p604_p9, %p998_p0 }
  0x6b   : > { %p610_p5 = por %p609_p13, %p608_p6 }
  0x6c   : > { %p606_p3 = pneg %p605_p11 }
  0x6d   : > { %p612_p7 = por %p611_p8, %p610_p5 }
  0x6f   : > { %p613_p4 = pnand %p612_p7, %p606_p3 }
  0x71   : > { %616 = shalt.err (!%p613_p4)
}
  0x72   : > { %460 = dma.vmem_to_hbm [thread:$0]  (%p998_p0), %s906_s6, 128, %s904_s29, %s271_s21  }
  0x73   : > { %s276_s24 = scalar_lea.sflag [#allocation9], %s887_s23  ;;  %s617_s19 = scalar_lea.vmem %s913_s7, 128 }
  0x74   : > { %p618_p10 = scmp.ne.s32.totalorder %s913_s7, %s617_s19  ;;  %s712_s8 = smov [#allocation8]  }
  0x75   : > { %s621_s10 = sshll.u32 %s712_s8, 4  ;;  %s622_s10 = int_to_ptr.vmem [resolvable:$false] %s621_s10 }
  0x76   : > { %p619_p12 = pnand %p618_p10, %p998_p0  ;;  %s623_s5 = scalar_lea.vmem %s622_s10, 256 }
  0x77   : > { %p624_p2 = scmp.lt.s32.totalorder %s913_s7, %s622_s10  ;;  %p625_p9 = scmp.lt.s32.totalorder %s623_s5, %s617_s19 }
  0x78   : > { %p620_p1 = pneg %p619_p12 }
  0x79   : > { %p626_p11 = por %p625_p9, %p624_p2 }
  0x7b   : > { %p627_p3 = pnand %p626_p11, %p620_p1 }
  0x7d   : > { %630 = shalt.err (!%p627_p3)
}
  0x7e   : > { %s631_s23 = scalar_lea.hbm %s911_s15, 128  ;;  %s635_s21 = scalar_lea.hbm %s985_s3, 256 }
  0x7f   : > { %p632_p6 = scmp.ne.s32.totalorder %s911_s15, %s631_s23  ;;  %p636_p8 = scmp.lt.u32.totalorder %s911_s15, %s985_s3 }
  0x80   : > { %p637_p7 = scmp.lt.u32.totalorder %s635_s21, %s631_s23  ;;  %p639_p10 = scmp.lt.u32.totalorder %s631_s23, %s911_s15 }
  0x81   : > { %p633_p13 = pnand %p632_p6, %p998_p0 }
  0x82   : > { %p638_p4 = por %p637_p7, %p636_p8 }
  0x83   : > { %p634_p5 = pneg %p633_p13 }
  0x84   : > { %p640_p12 = por %p639_p10, %p638_p4 }
  0x86   : > { %p641_p1 = pnand %p640_p12, %p634_p5 }
  0x88   : > { %644 = shalt.err (!%p641_p1)
}
  0x89   : > { %461 = dma.vmem_to_hbm [thread:$0]  (%p998_p0), %s913_s7, 128, %s911_s15, %s276_s24  }
  0x8a PF: > { %s314_s11 = sand.u32 1, %s687_s12   ;;  %p999_p2 = scmp.ne.s32.totalorder %s991_s27, 0 }
  0x8b   : > { %p1000_p9 = scmp.ge.s32.totalorder %s707_s17, 2  ;;  %s315_s4 = scalar_lea.sflag [#allocation4], %s314_s11 }
  0x8d   : > { %p472_p11 = pnand %p1000_p9, %p999_p2 }
  0x8f   : > { %678 = dma.done.wait (!%p472_p11), %s315_s4, 128  }
  0x90   : > { %680 = vsyncadd (!%p472_p11), %s315_s4, 4294967168  ;;  %s324_s30 = scalar_lea.sflag [#allocation9], %s314_s11 }
  0x91   : > { %682 = dma.done.wait (!%p472_p11), %s324_s30, 128  }
  0x92   : > { %684 = vsyncadd (!%p472_p11), %s324_s30, 4294967168  ;;  %s26_s17 = sadd.s32 1, %s707_s17   ;;  %s1001_s12 = smov %s691_s13 }
  0x93   : > { %p23_p3 = scmp.ge.s32.totalorder %s26_s17, 4   ;;  %s1002_s13 = smov %s695_s14 }
  0x94   : > { %s1003_s14 = smov %s789_s26  ;;  %s1004_s15 = smov %s703_s16 }
  0x95   : > { %s1005_s16 = smov %s1007_s20  ;;  %25 = sbr.rel (!%p23_p3) target bundleno = 10 (0xa), region = 107 }
  0x9c   :  { %329 = vsyncpa [#allocation3], 1 }
  0x9d   :  { %331 = vsyncpa [#allocation3 + $0x1], 1 }
  0x9e   :  { %332 = vsyncpa [#allocation6], 1 }
  0x9f   :  { %334 = vsyncpa [#allocation6 + $0x1], 1 }
  0xa0   :  { %335 = vsyncpa [#allocation4], 1 }
  0xa1   :  { %337 = vsyncpa [#allocation4 + $0x1], 1 }
  0xa2   :  { %338 = vsyncpa [#allocation9], 1 }
  0xa3   :  { %340 = vsyncpa [#allocation9 + $0x1], 1 }

</bundles_post_ra>
